<compile_context>
chip_gen: v7x
topology: tpu7x:2x2x1
jax: 0.10.0
libtpu: 0.0.40
codegen_flags: <defaults>
</compile_context>

<pallas_src>
import jax
import jax.numpy as jnp
from jax import lax
from jax.experimental import pallas as pl
from jax.experimental.pallas import tpu as pltpu

# ---- model hyper-parameters (args) ------------------------------------------
B = 2          # batch
N_SEQ = 8      # sequence length
D_MODEL = 32   # args.d_model
N_HEADS = 2    # args.n_heads  (must be > 1: project_out path, avoids dim_head bug)
HEAD_DIM = D_MODEL // N_HEADS          # 16  (to_qkv output per q/k/v chunk)
D_PER = HEAD_DIM // N_HEADS            # 8   (per-head inner dim after rearrange)
SCALE = HEAD_DIM ** (-0.5)             # PyTorch uses head_dim for the scale
G = B * N_HEADS                        # fused (batch, head) dim for batched matmuls


def _attention_kernel(x_ref, wqkv_ref, wout_ref, bout_ref, y_ref, attn_ref):
    # x_ref:    (B, N, D)
    # wqkv_ref: (3*G, D, d)   index = chunk*G + b*H + h  (pre-split per chunk/head)
    # wout_ref: (G, d, D)     index = b*H + h
    # bout_ref: (1, 1, D)
    # y_ref:    (B, N, D)
    # attn_ref: (B, H, N, N)
    x = x_ref[...]                                                   # (B, N, D)

    # Broadcast x once over (chunk, head) so the whole QKV projection is a
    # single batched matmul with per-(chunk, batch, head) weight slabs.
    x_g3 = jnp.broadcast_to(
        x[None, :, None], (3, B, N_HEADS, N_SEQ, D_MODEL)
    ).reshape(3 * G, N_SEQ, D_MODEL)                                 # (3G, N, D)

    qkv = lax.dot_general(x_g3, wqkv_ref[...],
                          (((2,), (1,)), ((0,), (0,))),
                          preferred_element_type=jnp.float32)        # (3G, N, d)

    # Leading-dim slices only (no lane extraction).
    q = qkv[0 * G:1 * G]                                             # (G, N, d)
    k = qkv[1 * G:2 * G]                                             # (G, N, d)
    v = qkv[2 * G:3 * G]                                             # (G, N, d)

    # scores = q @ k^T * scale, batched over (b, h)
    scores = lax.dot_general(q, k, (((2,), (2,)), ((0,), (0,))),
                             preferred_element_type=jnp.float32) * SCALE  # (G, N, N)

    # numerically stable softmax; reciprocal instead of vector divide
    m = jnp.max(scores, axis=-1, keepdims=True)
    e = jnp.exp(scores - m)
    denom = jnp.sum(e, axis=-1, keepdims=True)
    attn = e * pl.reciprocal(denom)                                  # (G, N, N)

    # single store of the full attention-weights block
    attn_ref[...] = attn.reshape(B, N_HEADS, N_SEQ, N_SEQ)

    # context = attn @ v, batched over (b, h)
    ctx = lax.dot_general(attn, v, (((2,), (1,)), ((0,), (0,))),
                          preferred_element_type=jnp.float32)        # (G, N, d)

    # output projection: per-head slab matmul (batched), then sum over heads
    proj = lax.dot_general(ctx, wout_ref[...], (((2,), (1,)), ((0,), (0,))),
                           preferred_element_type=jnp.float32)       # (G, N, D)
    proj4 = proj.reshape(B, N_HEADS, N_SEQ, D_MODEL)
    y = proj4[:, 0]
    for h in range(1, N_HEADS):                                      # H-1 vector adds
        y = y + proj4[:, h]

    y_ref[...] = y + bout_ref[...]                                   # broadcast bias


def prepare_params(w_qkv, w_out, b_out):
    """One-time parameter prep (hoisted out of the per-call path).

    w_qkv: (3*HEAD_DIM, D_MODEL) torch Linear layout.
    w_out: (D_MODEL, HEAD_DIM)   torch Linear layout.
    b_out: (D_MODEL,)
    """
    # (3, H, d, D) -> (3, H, D, d): each head's q/k/v gets its own matmul slab
    w_heads = w_qkv.reshape(3, N_HEADS, D_PER, D_MODEL).transpose(0, 1, 3, 2)
    wqkv_g = jnp.broadcast_to(
        w_heads[:, None], (3, B, N_HEADS, D_MODEL, D_PER)
    ).reshape(3 * G, D_MODEL, D_PER)                                 # (3G, D, d)

    # (H*d, D) -> (H, d, D), tiled over batch so the batched matmul indexes b*H+h
    w_out_heads = jnp.transpose(w_out).reshape(N_HEADS, D_PER, D_MODEL)
    wout_g = jnp.broadcast_to(
        w_out_heads[None], (B, N_HEADS, D_PER, D_MODEL)
    ).reshape(G, D_PER, D_MODEL)                                     # (G, d, D)

    bout = b_out.reshape(1, 1, D_MODEL)
    return wqkv_g, wout_g, bout


@jax.jit
def attention_forward(x, wqkv_g, wout_g, bout):
    Bx, N, D = x.shape
    out_shape = (
        jax.ShapeDtypeStruct((Bx, N, D), jnp.float32),
        jax.ShapeDtypeStruct((Bx, N_HEADS, N, N), jnp.float32),
    )
    y, attn = pl.pallas_call(
        _attention_kernel,
        out_shape=out_shape,
        grid=(1,),  # single grid step: whole problem fits trivially in VMEM
        in_specs=[
            pl.BlockSpec((Bx, N, D), lambda i: (0, 0, 0)),
            pl.BlockSpec((3 * G, D, D_PER), lambda i: (0, 0, 0)),
            pl.BlockSpec((G, D_PER, D), lambda i: (0, 0, 0)),
            pl.BlockSpec((1, 1, D), lambda i: (0, 0, 0)),
        ],
        out_specs=[
            pl.BlockSpec((Bx, N, D), lambda i: (0, 0, 0)),
            pl.BlockSpec((Bx, N_HEADS, N, N), lambda i: (0, 0, 0, 0)),
        ],
        compiler_params=pltpu.CompilerParams(
            dimension_semantics=("arbitrary",)),
    )(x, wqkv_g, wout_g, bout)
    return y, attn


def attention_reference(x, w_qkv, w_out, b_out):
    """Pure-JAX replica of the PyTorch forward (eval mode)."""
    Bx, N, D = x.shape
    qkv = jnp.einsum('bnd,od->bno', x, w_qkv)                 # (B, N, 3*HEAD_DIM)
    q, k, v = jnp.split(qkv, 3, axis=-1)                      # each (B, N, HEAD_DIM)

    def split_heads(t):  # 'b n (h d) -> b h n d'
        return t.reshape(Bx, N, N_HEADS, D_PER).transpose(0, 2, 1, 3)

    q, k, v = map(split_heads, (q, k, v))
    dots = jnp.einsum('bhnd,bhmd->bhnm', q, k) * SCALE
    attn = jax.nn.softmax(dots, axis=-1)
    out = jnp.einsum('bhnm,bhmd->bhnd', attn, v)
    out = out.transpose(0, 2, 1, 3).reshape(Bx, N, HEAD_DIM)  # 'b h n d -> b n (h d)'
    y = jnp.einsum('bnk,dk->bnd', out, w_out) + b_out
    return y, attn


if __name__ == "__main__":
    key = jax.random.PRNGKey(0)
    kx, kq, kw, kb = jax.random.split(key, 4)

    x = jax.random.normal(kx, (B, N_SEQ, D_MODEL), dtype=jnp.float32)
    # torch.nn.Linear weight shapes: (out_features, in_features)
    w_qkv = jax.random.normal(kq, (3 * HEAD_DIM, D_MODEL), dtype=jnp.float32) * 0.1
    w_out = jax.random.normal(kw, (D_MODEL, HEAD_DIM), dtype=jnp.float32) * 0.1
    b_out = jax.random.normal(kb, (D_MODEL,), dtype=jnp.float32) * 0.1

    # one-time parameter prep (transposes/reshapes hoisted out of per-call path)
    wqkv_g, wout_g, bout = prepare_params(w_qkv, w_out, b_out)

    y, attn = attention_forward(x, wqkv_g, wout_g, bout)
    jax.block_until_ready((y, attn))

    y_ref, attn_ref_v = attention_reference(x, w_qkv, w_out, b_out)
    assert y.shape == (B, N_SEQ, D_MODEL)
    assert attn.shape == (B, N_HEADS, N_SEQ, N_SEQ)
    assert jnp.allclose(y, y_ref, atol=1e-4, rtol=1e-4)
    assert jnp.allclose(attn, attn_ref_v, atol=1e-5, rtol=1e-5)

    print("KERNEL_OK")
</pallas_src>

<mosaic_0001>
module attributes {stable_mosaic.version = 11 : i64} {
  func.func @_attention_kernel(%arg0: i32, %arg1: memref<2x8x32xf32, #tpu.memory_space<vmem>>, %arg2: memref<12x32x8xf32, #tpu.memory_space<vmem>>, %arg3: memref<4x8x32xf32, #tpu.memory_space<vmem>>, %arg4: memref<1x1x32xf32, #tpu.memory_space<vmem>>, %arg5: memref<2x8x32xf32, #tpu.memory_space<vmem>>, %arg6: memref<2x2x8x8xf32, #tpu.memory_space<vmem>>) attributes {dimension_semantics = [#tpu.dimension_semantics<arbitrary>], iteration_bounds = array<i64: 1>, scalar_prefetch = 0 : i64, scratch_operands = 0 : i64, tpu.core_type = #tpu.core_type<tc>, window_params = [{pipeline_mode = #tpu.pipeline_mode<synchronous>, transform_indices = @transform_0, window_bounds = array<i64: 2, 8, 32>}, {pipeline_mode = #tpu.pipeline_mode<synchronous>, transform_indices = @transform_1, window_bounds = array<i64: 12, 32, 8>}, {pipeline_mode = #tpu.pipeline_mode<synchronous>, transform_indices = @transform_2, window_bounds = array<i64: 4, 8, 32>}, {pipeline_mode = #tpu.pipeline_mode<synchronous>, transform_indices = @transform_3, window_bounds = array<i64: 1, 1, 32>}, {pipeline_mode = #tpu.pipeline_mode<synchronous>, transform_indices = @transform_4, window_bounds = array<i64: 2, 8, 32>}, {pipeline_mode = #tpu.pipeline_mode<synchronous>, transform_indices = @transform_5, window_bounds = array<i64: 2, 2, 8, 8>}]} {
    %c0 = arith.constant 0 : index
    %c0_0 = arith.constant 0 : index
    %c0_1 = arith.constant 0 : index
    %0 = vector.load %arg1[%c0, %c0_0, %c0_1] : memref<2x8x32xf32, #tpu.memory_space<vmem>>, vector<2x8x32xf32>
    %1 = vector.shape_cast %0 : vector<2x8x32xf32> to vector<1x2x1x8x32xf32>
    %2 = vector.shape_cast %1 : vector<1x2x1x8x32xf32> to vector<1x2x1x8x32xf32>
    %3 = vector.broadcast %2 : vector<1x2x1x8x32xf32> to vector<3x2x2x8x32xf32>
    %4 = vector.shape_cast %3 : vector<3x2x2x8x32xf32> to vector<12x8x32xf32>
    %c0_2 = arith.constant 0 : index
    %c0_3 = arith.constant 0 : index
    %c0_4 = arith.constant 0 : index
    %5 = vector.load %arg2[%c0_2, %c0_3, %c0_4] : memref<12x32x8xf32, #tpu.memory_space<vmem>>, vector<12x32x8xf32>
    %cst = arith.constant dense<0.000000e+00> : vector<12x8x8xf32>
    %6 = tpu.matmul %4, %5, %cst {dimension_numbers = #tpu.dot_dimension_numbers<[2], [1], [1], [2], [0, 0, 0, 1, 1, 2], [0], [0]>} : vector<12x8x32xf32>, vector<12x32x8xf32>, vector<12x8x8xf32> -> vector<12x8x8xf32>
    %7 = vector.extract_strided_slice %6 {offsets = [0, 0, 0], sizes = [4, 8, 8], strides = [1, 1, 1]} : vector<12x8x8xf32> to vector<4x8x8xf32>
    %8 = vector.extract_strided_slice %6 {offsets = [4, 0, 0], sizes = [4, 8, 8], strides = [1, 1, 1]} : vector<12x8x8xf32> to vector<4x8x8xf32>
    %9 = vector.extract_strided_slice %6 {offsets = [8, 0, 0], sizes = [4, 8, 8], strides = [1, 1, 1]} : vector<12x8x8xf32> to vector<4x8x8xf32>
    %cst_5 = arith.constant dense<0.000000e+00> : vector<4x8x8xf32>
    %10 = tpu.matmul %7, %8, %cst_5 {dimension_numbers = #tpu.dot_dimension_numbers<[2], [2], [1], [1], [0, 0, 0, 1, 1, 1], [0], [0]>} : vector<4x8x8xf32>, vector<4x8x8xf32>, vector<4x8x8xf32> -> vector<4x8x8xf32>
    %cst_6 = arith.constant 2.500000e-01 : f32
    %11 = vector.broadcast %cst_6 : f32 to vector<4x8x8xf32>
    %12 = arith.mulf %10, %11 : vector<4x8x8xf32>
    %cst_7 = arith.constant dense<0xFF800000> : vector<4x8xf32>
    %13 = vector.multi_reduction <maximumf>, %12, %cst_7 [2] : vector<4x8x8xf32> to vector<4x8xf32>
    %14 = vector.shape_cast %13 : vector<4x8xf32> to vector<4x8x1xf32>
    %15 = vector.broadcast %14 : vector<4x8x1xf32> to vector<4x8x8xf32>
    %16 = arith.subf %12, %15 : vector<4x8x8xf32>
    %17 = math.exp %16 : vector<4x8x8xf32>
    %cst_8 = arith.constant dense<0.000000e+00> : vector<4x8xf32>
    %18 = vector.multi_reduction <add>, %17, %cst_8 [2] : vector<4x8x8xf32> to vector<4x8xf32>
    %19 = vector.shape_cast %18 : vector<4x8xf32> to vector<4x8x1xf32>
    %20 = tpu.reciprocal %19 : vector<4x8x1xf32> -> vector<4x8x1xf32>
    %21 = vector.broadcast %20 : vector<4x8x1xf32> to vector<4x8x8xf32>
    %22 = arith.mulf %17, %21 : vector<4x8x8xf32>
    %23 = vector.shape_cast %22 : vector<4x8x8xf32> to vector<2x2x8x8xf32>
    %c0_9 = arith.constant 0 : index
    %c0_10 = arith.constant 0 : index
    %c0_11 = arith.constant 0 : index
    %c0_12 = arith.constant 0 : index
    %24 = vector.load %arg6[%c0_9, %c0_10, %c0_11, %c0_12] : memref<2x2x8x8xf32, #tpu.memory_space<vmem>>, vector<2x2x8x8xf32>
    tpu.vector_store %arg6[%c0_9, %c0_10, %c0_11, %c0_12], %23 {strides = array<i32>} : memref<2x2x8x8xf32, #tpu.memory_space<vmem>>, vector<2x2x8x8xf32>,
    %cst_13 = arith.constant dense<0.000000e+00> : vector<4x8x8xf32>
    %25 = tpu.matmul %22, %9, %cst_13 {dimension_numbers = #tpu.dot_dimension_numbers<[2], [1], [1], [2], [0, 0, 0, 1, 1, 2], [0], [0]>} : vector<4x8x8xf32>, vector<4x8x8xf32>, vector<4x8x8xf32> -> vector<4x8x8xf32>
    %c0_14 = arith.constant 0 : index
    %c0_15 = arith.constant 0 : index
    %c0_16 = arith.constant 0 : index
    %26 = vector.load %arg3[%c0_14, %c0_15, %c0_16] : memref<4x8x32xf32, #tpu.memory_space<vmem>>, vector<4x8x32xf32>
    %cst_17 = arith.constant dense<0.000000e+00> : vector<4x8x32xf32>
    %27 = tpu.matmul %25, %26, %cst_17 {dimension_numbers = #tpu.dot_dimension_numbers<[2], [1], [1], [2], [0, 0, 0, 1, 1, 2], [0], [0]>} : vector<4x8x8xf32>, vector<4x8x32xf32>, vector<4x8x32xf32> -> vector<4x8x32xf32>
    %28 = vector.shape_cast %27 : vector<4x8x32xf32> to vector<2x2x8x32xf32>
    %29 = vector.extract_strided_slice %28 {offsets = [0, 0, 0, 0], sizes = [2, 1, 8, 32], strides = [1, 1, 1, 1]} : vector<2x2x8x32xf32> to vector<2x1x8x32xf32>
    %30 = vector.shape_cast %29 : vector<2x1x8x32xf32> to vector<2x8x32xf32>
    %31 = vector.extract_strided_slice %28 {offsets = [0, 1, 0, 0], sizes = [2, 1, 8, 32], strides = [1, 1, 1, 1]} : vector<2x2x8x32xf32> to vector<2x1x8x32xf32>
    %32 = vector.shape_cast %31 : vector<2x1x8x32xf32> to vector<2x8x32xf32>
    %33 = arith.addf %30, %32 : vector<2x8x32xf32>
    %c0_18 = arith.constant 0 : index
    %c0_19 = arith.constant 0 : index
    %c0_20 = arith.constant 0 : index
    %34 = vector.load %arg4[%c0_18, %c0_19, %c0_20] : memref<1x1x32xf32, #tpu.memory_space<vmem>>, vector<1x1x32xf32>
    %35 = vector.broadcast %34 : vector<1x1x32xf32> to vector<2x8x32xf32>
    %36 = arith.addf %33, %35 : vector<2x8x32xf32>
    %c0_21 = arith.constant 0 : index
    %c0_22 = arith.constant 0 : index
    %c0_23 = arith.constant 0 : index
    %37 = vector.load %arg5[%c0_21, %c0_22, %c0_23] : memref<2x8x32xf32, #tpu.memory_space<vmem>>, vector<2x8x32xf32>
    tpu.vector_store %arg5[%c0_21, %c0_22, %c0_23], %36 {strides = array<i32>} : memref<2x8x32xf32, #tpu.memory_space<vmem>>, vector<2x8x32xf32>,
    return
  }
  func.func @transform_0(%arg0: i32) -> (i32, i32, i32) {
    %c0_i32 = arith.constant 0 : i32
    %c0_i32_0 = arith.constant 0 : i32
    %c0_i32_1 = arith.constant 0 : i32
    %c0_i32_2 = arith.constant 0 : i32
    return %c0_i32, %c0_i32_0, %c0_i32_1 : i32, i32, i32
  }
  func.func @transform_1(%arg0: i32) -> (i32, i32, i32) {
    %c0_i32 = arith.constant 0 : i32
    %c0_i32_0 = arith.constant 0 : i32
    %c0_i32_1 = arith.constant 0 : i32
    %c0_i32_2 = arith.constant 0 : i32
    return %c0_i32, %c0_i32_0, %c0_i32_1 : i32, i32, i32
  }
  func.func @transform_2(%arg0: i32) -> (i32, i32, i32) {
    %c0_i32 = arith.constant 0 : i32
    %c0_i32_0 = arith.constant 0 : i32
    %c0_i32_1 = arith.constant 0 : i32
    %c0_i32_2 = arith.constant 0 : i32
    return %c0_i32, %c0_i32_0, %c0_i32_1 : i32, i32, i32
  }
  func.func @transform_3(%arg0: i32) -> (i32, i32, i32) {
    %c0_i32 = arith.constant 0 : i32
    %c0_i32_0 = arith.constant 0 : i32
    %c0_i32_1 = arith.constant 0 : i32
    %c0_i32_2 = arith.constant 0 : i32
    return %c0_i32, %c0_i32_0, %c0_i32_1 : i32, i32, i32
  }
  func.func @transform_4(%arg0: i32) -> (i32, i32, i32) {
    %c0_i32 = arith.constant 0 : i32
    %c0_i32_0 = arith.constant 0 : i32
    %c0_i32_1 = arith.constant 0 : i32
    %c0_i32_2 = arith.constant 0 : i32
    return %c0_i32, %c0_i32_0, %c0_i32_1 : i32, i32, i32
  }
  func.func @transform_5(%arg0: i32) -> (i32, i32, i32, i32) {
    %c0_i32 = arith.constant 0 : i32
    %c0_i32_0 = arith.constant 0 : i32
    %c0_i32_1 = arith.constant 0 : i32
    %c0_i32_2 = arith.constant 0 : i32
    %c0_i32_3 = arith.constant 0 : i32
    return %c0_i32, %c0_i32_0, %c0_i32_1, %c0_i32_2 : i32, i32, i32, i32
  }
}

</mosaic_0001>

<bundles_post_ra>
// kernel: attention_forward.1
= control target key start
LH: loop header
LB: loop body
LE: loop exit
PB: predicated region body
PF: predicated region fallthrough
CT: control target
= control target key end

     0   :  { %11 = vsyncpa [#allocation3], 0  ;;  %v2356_v3 = vmov 0.0|0.0   ;;  %vm2357_vm0 = vmmov 0   ;;  %v2358_v11 = vmov 0.0   ;;  %vm71_vm1 = vcmask 261120   ;;  %s2736_s0 = inlined_call_operand.vmem [shape: f32[2,8,32], index: 0, kind: input, shape index: {}]   ;;  %s2737_s1 = inlined_call_operand.vmem [shape: f32[12,32,8], index: 1, kind: input, shape index: {}]   ;;  %s2738_s2 = inlined_call_operand.vmem [shape: f32[4,8,32], index: 2, kind: input, shape index: {}]   ;;  %s2739_s3 = inlined_call_operand.vmem [shape: f32[1,1,32], index: 3, kind: input, shape index: {}]   ;;  %s2740_s4 = inlined_call_operand.hbm [shape: f32[2,8,32], index: 4, kind: output, shape index: {0}]   ;;  %s2741_s5 = inlined_call_operand.hbm [shape: f32[2,2,8,8], index: 5, kind: output, shape index: {1}]  }
   0x1   :  { %v23_v0 = vld [vmem:[%s2737_s1] sm:$0xff]  ;;  %v24_v1 = vld [vmem:[%s2737_s1 + $0x8] sm:$0xff]  ;;  %2213 = vmatprep.subr.bf16.mxu0 %v2356_v3  ;;  %2219 = vmatprep.subr.bf16.mxu1 %v2356_v3  ;;  %v25_v6 = vld [vmem:[%s2737_s1 + $0x10] sm:$0xff] }
   0x2   :  { %v27_v2 = vld [vmem:[%s2737_s1 + $0x20] sm:$0xff]  ;;  %v2214_v4 = vpack.c.bf16 %v24_v1, %v23_v0  ;;  %v28_v5 = vld [vmem:[%s2737_s1 + $0x28] sm:$0xff]  ;;  %v26_v7 = vld [vmem:[%s2737_s1 + $0x18] sm:$0xff]  ;;  %2029 = vmatprep.mubr.msk.f32.mxu0 %vm2357_vm0, %v2358_v11  ;;  %2040 = vmatprep.mubr.msk.f32.mxu1 %vm2357_vm0, %v2358_v11 }
   0x3   :  { %v2220_v8 = vpack.c.bf16 %v28_v5, %v27_v2  ;;  %v29_v9 = vld [vmem:[%s2737_s1 + $0x30] sm:$0xff]  ;;  %v30_v10 = vld [vmem:[%s2737_s1 + $0x38] sm:$0xff]  ;;  %v2217_v12 = vpack.c.bf16 %v26_v7, %v25_v6  ;;  %v31_v14 = vld [vmem:[%s2737_s1 + $0x40] sm:$0xff] }
   0x4   :  { %2215 = vmatpush3.bf16.msra.mxu0 %v2214_v4  ;;  %v2223_v13 = vpack.c.bf16 %v30_v10, %v29_v9  ;;  %v32_v15 = vld [vmem:[%s2737_s1 + $0x48] sm:$0xff]  ;;  %v35_v16 = vld [vmem:[%s2737_s1 + $0x60] sm:$0xff]  ;;  %v33_v21 = vld [vmem:[%s2737_s1 + $0x50] sm:$0xff] }
   0x5   :  { %2221 = vmatpush3.bf16.msra.mxu1 %v2220_v8  ;;  %2216 = vmatprep.subr.bf16.mxu0 %v2356_v3  ;;  %v36_v17 = vld [vmem:[%s2737_s1 + $0x68] sm:$0xff]  ;;  %v2440_v18 = vld [vmem:[%s2736_s0] sm:$0xff]  ;;  %v2226_v19 = vpack.c.bf16 %v32_v15, %v31_v14  ;;  %v34_v22 = vld [vmem:[%s2737_s1 + $0x58] sm:$0xff] }
   0x6   :  { %2222 = vmatprep.subr.bf16.mxu1 %v2356_v3  ;;  %v2232_v20 = vpack.c.bf16 %v36_v17, %v35_v16  ;;  %v37_v23 = vld [vmem:[%s2737_s1 + $0x70] sm:$0xff]  ;;  %v38_v24 = vld [vmem:[%s2737_s1 + $0x78] sm:$0xff]  ;;  %v2229_v25 = vpack.c.bf16 %v34_v22, %v33_v21  ;;  %v39_v27 = vld [vmem:[%s2737_s1 + $0x80] sm:$0xff] }
   0x7   :  { %v2235_v26 = vpack.c.bf16 %v38_v24, %v37_v23  ;;  %v40_v28 = vld [vmem:[%s2737_s1 + $0x88] sm:$0xff] }
   0x8   :  { %2218 = vmatpush3.bf16.msra.mxu0 %v2217_v12 }
   0x9   :  { %2224 = vmatpush3.bf16.msra.mxu1 %v2223_v13  ;;  %2225 = vmatprep.subr.bf16.mxu0 %v2356_v3 }
   0xa   :  { %2231 = vmatprep.subr.bf16.mxu1 %v2356_v3 }
   0xb   :  { %2030 = vmatmul.mubr.msk.f32.vlgmr.msra.gmra.mrb[0].mxu0 %vm71_vm1, %v2440_v18 }
   0xc   :  { %2041 = vmatmul.mubr.msk.f32.vlgmr.msra.gmra.mrb[0].mxu1 %vm71_vm1, %v2440_v18  ;;  %2227 = vmatpush3.bf16.msra.mxu0 %v2226_v19 }
   0xd   :  { %2233 = vmatpush3.bf16.msra.mxu1 %v2232_v20  ;;  %2228 = vmatprep.subr.bf16.mxu0 %v2356_v3 }
   0xe   :  { %12 = vsyncpa [#allocation5], 0  ;;  %2234 = vmatprep.subr.bf16.mxu1 %v2356_v3  ;;  %2051 = vmatprep.mubr.msk.f32.mxu0 %vm2357_vm0, %v2358_v11  ;;  %v43_v29 = vld [vmem:[%s2737_s1 + $0xa0] sm:$0xff]  ;;  %v44_v30 = vld [vmem:[%s2737_s1 + $0xa8] sm:$0xff]  ;;  %v2238_v32 = vpack.c.bf16 %v40_v28, %v39_v27  ;;  %vm918_vm2 = vcmask 64512   ;;  %s2359_s22 = smov [#allocation4]  }
   0xf   :  { %2062 = vmatprep.mubr.msk.f32.mxu1 %vm2357_vm0, %v2358_v11  ;;  %v2481_v31 = vld [vmem:[%s2736_s0 + $0x8] sm:$0xff]  ;;  %v2244_v33 = vpack.c.bf16 %v44_v30, %v43_v29  ;;  %v41_v34 = vld [vmem:[%s2737_s1 + $0x90] sm:$0xff]  ;;  %v42_v35 = vld [vmem:[%s2737_s1 + $0x98] sm:$0xff]  ;;  %s1893_s23 = sshll.u32 %s2359_s22, 4  ;;  %s1894_s23 = int_to_ptr.vmem [resolvable:$true] %s1893_s23 }
  0x10   :  { %2230 = vmatpush3.bf16.msra.mxu0 %v2229_v25  ;;  %v45_v36 = vld [vmem:[%s2737_s1 + $0xb0] sm:$0xff]  ;;  %v46_v37 = vld [vmem:[%s2737_s1 + $0xb8] sm:$0xff]  ;;  %v2241_v38 = vpack.c.bf16 %v42_v35, %v41_v34  ;;  %v47_v40 = vld [vmem:[%s2737_s1 + $0xc0] sm:$0xff]  ;;  %p2313_p1 = scmp.lt.s32.totalorder %s1894_s23, %s1894_s23 }
  0x11   :  { %2236 = vmatpush3.bf16.msra.mxu1 %v2235_v26  ;;  %2237 = vmatprep.subr.bf16.mxu0 %v2356_v3  ;;  %v2247_v39 = vpack.c.bf16 %v46_v37, %v45_v36  ;;  %v48_v41 = vld [vmem:[%s2737_s1 + $0xc8] sm:$0xff]  ;;  %v51_v42 = vld [vmem:[%s2737_s1 + $0xe0] sm:$0xff]  ;;  %v49_v46 = vld [vmem:[%s2737_s1 + $0xd0] sm:$0xff] }
  0x12   :  { %2243 = vmatprep.subr.bf16.mxu1 %v2356_v3  ;;  %v52_v43 = vld [vmem:[%s2737_s1 + $0xe8] sm:$0xff]  ;;  %v2250_v44 = vpack.c.bf16 %v48_v41, %v47_v40  ;;  %v50_v47 = vld [vmem:[%s2737_s1 + $0xd8] sm:$0xff]  ;;  %v53_v48 = vld [vmem:[%s2737_s1 + $0xf0] sm:$0xff] }
  0x13   :  { %2052 = vmatmul.mubr.msk.f32.vlgmr.msra.gmra.mrb[2].mxu0 %vm71_vm1, %v2481_v31  ;;  %v2256_v45 = vpack.c.bf16 %v52_v43, %v51_v42  ;;  %v54_v49 = vld [vmem:[%s2737_s1 + $0xf8] sm:$0xff]  ;;  %v2253_v50 = vpack.c.bf16 %v50_v47, %v49_v46  ;;  %v55_v52 = vld [vmem:[%s2737_s1 + $0x100] sm:$0xff]  ;;  %v56_v53 = vld [vmem:[%s2737_s1 + $0x108] sm:$0xff] }
  0x14   :  { %2063 = vmatmul.mubr.msk.f32.vlgmr.msra.gmra.mrb[2].mxu1 %vm71_vm1, %v2481_v31  ;;  %2239 = vmatpush3.bf16.msra.mxu0 %v2238_v32  ;;  %v2259_v51 = vpack.c.bf16 %v54_v49, %v53_v48  ;;  %v59_v54 = vld [vmem:[%s2737_s1 + $0x120] sm:$0xff]  ;;  %v60_v55 = vld [vmem:[%s2737_s1 + $0x128] sm:$0xff]  ;;  %v2262_v56 = vpack.c.bf16 %v56_v53, %v55_v52  ;;  %v57_v58 = vld [vmem:[%s2737_s1 + $0x110] sm:$0xff] }
  0x15   :  { %2245 = vmatpush3.bf16.msra.mxu1 %v2244_v33  ;;  %2240 = vmatprep.subr.bf16.mxu0 %v2356_v3  ;;  %v2268_v57 = vpack.c.bf16 %v60_v55, %v59_v54  ;;  %v58_v59 = vld [vmem:[%s2737_s1 + $0x118] sm:$0xff]  ;;  %v61_v60 = vld [vmem:[%s2737_s1 + $0x130] sm:$0xff]  ;;  %v63_v0 = vld [vmem:[%s2737_s1 + $0x140] sm:$0xff] }
  0x16   :  { %2246 = vmatprep.subr.bf16.mxu1 %v2356_v3  ;;  %2073 = vmatprep.mubr.msk.f32.mxu0 %vm2357_vm0, %v2358_v11  ;;  %v2265_v61 = vpack.c.bf16 %v58_v59, %v57_v58  ;;  %v62_v62 = vld [vmem:[%s2737_s1 + $0x138] sm:$0xff]  ;;  %v64_v1 = vld [vmem:[%s2737_s1 + $0x148] sm:$0xff]  ;;  %v67_v2 = vld [vmem:[%s2737_s1 + $0x160] sm:$0xff] }
  0x17   :  { %2084 = vmatprep.mubr.msk.f32.mxu1 %vm2357_vm0, %v2358_v11  ;;  %v2271_v63 = vpack.c.bf16 %v62_v62, %v61_v60  ;;  %v2274_v4 = vpack.c.bf16 %v64_v1, %v63_v0  ;;  %v68_v5 = vld [vmem:[%s2737_s1 + $0x168] sm:$0xff]  ;;  %v65_v7 = vld [vmem:[%s2737_s1 + $0x150] sm:$0xff]  ;;  %v66_v8 = vld [vmem:[%s2737_s1 + $0x158] sm:$0xff] }
  0x18   :  { %2242 = vmatpush3.bf16.msra.mxu0 %v2241_v38  ;;  %v2280_v6 = vpack.c.bf16 %v68_v5, %v67_v2  ;;  %v69_v9 = vld [vmem:[%s2737_s1 + $0x170] sm:$0xff]  ;;  %v2277_v10 = vpack.c.bf16 %v66_v8, %v65_v7  ;;  %v70_v12 = vld [vmem:[%s2737_s1 + $0x178] sm:$0xff] }
  0x19   :  { %2248 = vmatpush3.bf16.msra.mxu1 %v2247_v39  ;;  %2249 = vmatprep.subr.bf16.mxu0 %v2356_v3  ;;  %v2283_v13 = vpack.c.bf16 %v70_v12, %v69_v9 }
  0x1a   :  { %2255 = vmatprep.subr.bf16.mxu1 %v2356_v3 }
  0x1b   :  { %2074 = vmatmul.mubr.msk.f32.vlgmr.msra.gmra.mrb[4].mxu0 %vm71_vm1, %v2440_v18 }
  0x1c   :  { %2085 = vmatmul.mubr.msk.f32.vlgmr.msra.gmra.mrb[4].mxu1 %vm71_vm1, %v2440_v18  ;;  %2251 = vmatpush3.bf16.msra.mxu0 %v2250_v44 }
  0x1d   :  { %2257 = vmatpush3.bf16.msra.mxu1 %v2256_v45  ;;  %2252 = vmatprep.subr.bf16.mxu0 %v2356_v3 }
  0x1e   :  { %2258 = vmatprep.subr.bf16.mxu1 %v2356_v3  ;;  %2095 = vmatprep.mubr.msk.f32.mxu0 %vm2357_vm0, %v2358_v11 }
  0x1f   :  { %2106 = vmatprep.mubr.msk.f32.mxu1 %vm2357_vm0, %v2358_v11 }
  0x20   :  { %2254 = vmatpush3.bf16.msra.mxu0 %v2253_v50 }
  0x21   :  { %2260 = vmatpush3.bf16.msra.mxu1 %v2259_v51  ;;  %2261 = vmatprep.subr.bf16.mxu0 %v2356_v3 }
  0x22   :  { %2267 = vmatprep.subr.bf16.mxu1 %v2356_v3 }
  0x23   :  { %2096 = vmatmul.mubr.msk.f32.vlgmr.msra.gmra.mrb[6].mxu0 %vm71_vm1, %v2481_v31 }
  0x24   :  { %2107 = vmatmul.mubr.msk.f32.vlgmr.msra.gmra.mrb[6].mxu1 %vm71_vm1, %v2481_v31  ;;  %2263 = vmatpush3.bf16.msra.mxu0 %v2262_v56 }
  0x25   :  { %2269 = vmatpush3.bf16.msra.mxu1 %v2268_v57  ;;  %2264 = vmatprep.subr.bf16.mxu0 %v2356_v3 }
  0x26   :  { %2270 = vmatprep.subr.bf16.mxu1 %v2356_v3  ;;  %2117 = vmatprep.mubr.msk.f32.mxu0 %vm2357_vm0, %v2358_v11 }
  0x27   :  { %2128 = vmatprep.mubr.msk.f32.mxu1 %vm2357_vm0, %v2358_v11 }
  0x28   :  { %2266 = vmatpush3.bf16.msra.mxu0 %v2265_v61 }
  0x29   :  { %2272 = vmatpush3.bf16.msra.mxu1 %v2271_v63  ;;  %2273 = vmatprep.subr.bf16.mxu0 %v2356_v3 }
  0x2a   :  { %2279 = vmatprep.subr.bf16.mxu1 %v2356_v3 }
  0x2b   :  { %2118 = vmatmul.mubr.msk.f32.vlgmr.msra.gmra.mrb[8].mxu0 %vm71_vm1, %v2440_v18 }
  0x2c   :  { %2129 = vmatmul.mubr.msk.f32.vlgmr.msra.gmra.mrb[8].mxu1 %vm71_vm1, %v2440_v18  ;;  %2275 = vmatpush3.bf16.msra.mxu0 %v2274_v4 }
  0x2d   :  { %2281 = vmatpush3.bf16.msra.mxu1 %v2280_v6  ;;  %2276 = vmatprep.subr.bf16.mxu0 %v2356_v3 }
  0x2e   :  { %2282 = vmatprep.subr.bf16.mxu1 %v2356_v3  ;;  %2139 = vmatprep.mubr.msk.f32.mxu0 %vm2357_vm0, %v2358_v11 }
  0x2f   :  { %2150 = vmatprep.mubr.msk.f32.mxu1 %vm2357_vm0, %v2358_v11 }
  0x30   :  { %2278 = vmatpush3.bf16.msra.mxu0 %v2277_v10 }
  0x31   :  { %2284 = vmatpush3.bf16.msra.mxu1 %v2283_v13  ;;  %2153 = vmatprep.subr.mxu0 %v2358_v11 }
  0x32   :  { %2158 = vmatprep.subr.mxu1 %v2358_v11 }
  0x33   :  { %2140 = vmatmul.mubr.msk.f32.vlgmr.msra.gmra.mrb[10].mxu0 %vm71_vm1, %v2481_v31 }
  0x34   :  { %2151 = vmatmul.mubr.msk.f32.vlgmr.msra.gmra.mrb[10].mxu1 %vm71_vm1, %v2481_v31  ;;  %2155 = vmatprep.mubr.msk.f32.mxu0 %vm2357_vm0, %v2358_v11 }
  0x35   :  { %2160 = vmatprep.mubr.msk.f32.mxu1 %vm2357_vm0, %v2358_v11 }
  0xde   :  { %v141_v3 = vpop.f32.mrb[0].mxu0 }
  0xdf   :  { %v2031_v14 = vpop.f32.mrb[1].mxu0  ;;  %v211_v15 = vpop.f32.mrb[0].mxu1 }
  0xe0   :  { %v2042_v16 = vpop.f32.mrb[1].mxu1 }
  0xe6   :  { %v284_v17 = vpop.f32.mrb[2].mxu0 }
  0xe7   :  { %v2053_v18 = vpop.f32.mrb[3].mxu0  ;;  %v354_v19 = vpop.f32.mrb[2].mxu1 }
  0xe8   :  { %v2064_v20 = vpop.f32.mrb[3].mxu1 }
  0xee   :  { %v424_v21 = vpop.f32.mrb[4].mxu0 }
  0xef   :  { %v494_v22 = vpop.f32.mrb[4].mxu1  ;;  %v2075_v23 = vpop.f32.mrb[5].mxu0  ;;  %2154 = vmatpush3.xpose.msk.msra.mxu0 %vm918_vm2, %v424_v21 }
  0xf0   :  { %2159 = vmatpush3.xpose.msk.msra.mxu1 %vm918_vm2, %v494_v22  ;;  %v2086_v24 = vpop.f32.mrb[5].mxu1  ;;  %2163 = vmatprep.subr.mxu0 %v2358_v11  ;;  %v1567_v22 = vld [vmem:[%s2738_s2] sm:$0xff]  ;;  %v1568_v23 = vld [vmem:[%s2738_s2 + $0x8] sm:$0xff] }
  0xf1   :  { %2168 = vmatprep.subr.mxu1 %v2358_v11  ;;  %v1569_v24 = vld [vmem:[%s2738_s2 + $0x10] sm:$0xff] }
  0xf2   :  { %2156 = vmatmul.mubr.msk.f32.vlgmr.msra.gmra.mrb[12].mxu0 %vm918_vm2, %v141_v3 }
  0xf3   :  { %2161 = vmatmul.mubr.msk.f32.vlgmr.msra.gmra.mrb[12].mxu1 %vm918_vm2, %v211_v15  ;;  %2165 = vmatprep.mubr.msk.f32.mxu0 %vm2357_vm0, %v2358_v11 }
  0xf4   :  { %2170 = vmatprep.mubr.msk.f32.mxu1 %vm2357_vm0, %v2358_v11 }
  0xf6   :  { %v564_v25 = vpop.f32.mrb[6].mxu0 }
  0xf7   :  { %v634_v26 = vpop.f32.mrb[6].mxu1  ;;  %v2097_v27 = vpop.f32.mrb[7].mxu0  ;;  %2164 = vmatpush3.xpose.msk.msra.mxu0 %vm918_vm2, %v564_v25 }
  0xf8   :  { %2169 = vmatpush3.xpose.msk.msra.mxu1 %vm918_vm2, %v634_v26  ;;  %v2108_v28 = vpop.f32.mrb[7].mxu1  ;;  %2173 = vmatprep.subr.mxu0 %v2358_v11  ;;  %v1570_v27 = vld [vmem:[%s2738_s2 + $0x18] sm:$0xff]  ;;  %s2308_s2 = scalar_lea.vmem %s1894_s23, 512 }
  0xf9   :  { %2178 = vmatprep.subr.mxu1 %v2358_v11  ;;  %p2309_p0 = scmp.ne.s32.totalorder %s1894_s23, %s2308_s2  ;;  %p2314_p2 = scmp.lt.s32.totalorder %s2308_s2, %s2308_s2 }
  0xfa   :  { %2166 = vmatmul.mubr.msk.f32.vlgmr.msra.gmra.mrb[14].mxu0 %vm918_vm2, %v284_v17 }
  0xfb   :  { %2171 = vmatmul.mubr.msk.f32.vlgmr.msra.gmra.mrb[14].mxu1 %vm918_vm2, %v354_v19  ;;  %2175 = vmatprep.mubr.msk.f32.mxu0 %vm2357_vm0, %v2358_v11  ;;  %p2315_p3 = por %p2314_p2, %p2313_p1 }
  0xfc   :  { %2180 = vmatprep.mubr.msk.f32.mxu1 %vm2357_vm0, %v2358_v11 }
  0xfd   :  { %p2316_p4 = pnand %p2315_p3, %p2309_p0 }
  0xfe   :  { %v704_v29 = vpop.f32.mrb[8].mxu0 }
  0xff   :  { %v2119_v30 = vpop.f32.mrb[9].mxu0  ;;  %2174 = vmatpush3.msra.mxu0 %v704_v29  ;;  %v774_v31 = vpop.f32.mrb[8].mxu1 }
 0x100   :  { %v2130_v32 = vpop.f32.mrb[9].mxu1  ;;  %2179 = vmatpush3.msra.mxu1 %v774_v31  ;;  %2183 = vmatprep.subr.mxu0 %v2358_v11 }
 0x101   :  { %2188 = vmatprep.subr.mxu1 %v2358_v11 }
 0x106   :  { %v2647_v33 = vpop.f32.mrb[10].mxu0 }
 0x107   :  { %v2649_v34 = vpop.f32.mrb[10].mxu1  ;;  %v2141_v35 = vpop.f32.mrb[11].mxu0 }
 0x108   :  { %v2152_v36 = vpop.f32.mrb[11].mxu1 }
 0x1c5   :  { %v991_v37 = vpop.f32.mrb[12].mxu0 }
 0x1c6   :  { %v1223_v38 = vmul.f32 0.25, %v991_v37  ;;  %v1067_v39 = vpop.f32.mrb[12].mxu1  ;;  %v2157_v40 = vpop.f32.mrb[13].mxu0 }
 0x1c7   :  { %v2162_v41 = vpop.f32.mrb[13].mxu1  ;;  %v1224_v42 = vmul.f32 0.25, %v1067_v39 }
 0x1c8   :  { %v1227_v43 = vsel %vm918_vm2, %v1223_v38, -inf }
 0x1c9   :  { %1228 = vmax.xlane.f32.xlu0 %v1227_v43  ;;  %v1230_v44 = vsel %vm918_vm2, %v1224_v42, -inf }
 0x1cd   :  { %1231 = vmax.xlane.f32.xlu0 %v1230_v44  ;;  %v1143_v45 = vpop.f32.mrb[14].mxu0 }
 0x1ce   :  { %v1219_v46 = vpop.f32.mrb[14].mxu1  ;;  %v1225_v47 = vmul.f32 0.25, %v1143_v45  ;;  %v2167_v48 = vpop.f32.mrb[15].mxu0 }
 0x1cf   :  { %v2172_v49 = vpop.f32.mrb[15].mxu1  ;;  %v1226_v50 = vmul.f32 0.25, %v1219_v46 }
 0x1d0   :  { %v1233_v51 = vsel %vm918_vm2, %v1225_v47, -inf }
 0x1d1   :  { %1234 = vmax.xlane.f32.xlu1 %v1233_v51  ;;  %v1236_v52 = vsel %vm918_vm2, %v1226_v50, -inf }
 0x1d5   :  { %1237 = vmax.xlane.f32.xlu1 %v1236_v52 }
 0x256   :  { %v1229_v53 = vpop.xlane.xlu0 %1228 }
 0x257   :  { %v1239_v54 = vsub.f32 %v1223_v38, %v1229_v53 }
 0x259   :  { %v1243_v55 = vmul.f32 1.442695, %v1239_v54 }
 0x25a   :  { %v1232_v56 = vpop.xlane.xlu0 %1231 }
 0x25b   :  { %2292 = vpow2.f32 %v1243_v55  ;;  %v1240_v57 = vsub.f32 %v1224_v42, %v1232_v56 }
 0x25d   :  { %v1245_v58 = vmul.f32 1.442695, %v1240_v57 }
 0x25e   :  { %v1235_v59 = vpop.xlane.xlu1 %1234 }
 0x25f   :  { %2294 = vpow2.f32 %v1245_v58  ;;  %v1241_v60 = vsub.f32 %v1225_v47, %v1235_v59 }
 0x261   :  { %v1247_v61 = vmul.f32 1.442695, %v1241_v60 }
 0x262   :  { %v1238_v62 = vpop.xlane.xlu1 %1237 }
 0x263   :  { %2296 = vpow2.f32 %v1247_v61  ;;  %v1242_v63 = vsub.f32 %v1226_v50, %v1238_v62 }
 0x265   :  { %v2293_v0 = vpop.eup %2292  ;;  %v1249_v1 = vmul.f32 1.442695, %v1242_v63 }
 0x266   :  { %v1251_v2 = vsel %vm918_vm2, %v2293_v0, 0.0 }
 0x267   :  { %2298 = vpow2.f32 %v1249_v1  ;;  %1252 = vadd.xlane.f32.xlu0 %v1251_v2 }
 0x269   :  { %v2295_v4 = vpop.eup %2294 }
 0x26a   :  { %v1254_v5 = vsel %vm918_vm2, %v2295_v4, 0.0 }
 0x26b   :  { %1255 = vadd.xlane.f32.xlu1 %v1254_v5 }
 0x26d   :  { %v2297_v6 = vpop.eup %2296 }
 0x26e   :  { %v1257_v7 = vsel %vm918_vm2, %v2297_v6, 0.0 }
 0x26f   :  { %1258 = vadd.xlane.f32.xlu0 %v1257_v7 }
 0x271   :  { %v2299_v8 = vpop.eup %2298 }
 0x272   :  { %v1260_v9 = vsel %vm918_vm2, %v2299_v8, 0.0 }
 0x273   :  { %1261 = vadd.xlane.f32.xlu1 %v1260_v9 }
 0x2f4   :  { %v1253_v10 = vpop.xlane.xlu0 %1252 }
 0x2f5   :  { %2300 = vrcp.f32 %v1253_v10 }
 0x2f8   :  { %v1256_v12 = vpop.xlane.xlu1 %1255 }
 0x2f9   :  { %2302 = vrcp.f32 %v1256_v12 }
 0x2fc   :  { %v1259_v13 = vpop.xlane.xlu0 %1258 }
 0x2fd   :  { %2304 = vrcp.f32 %v1259_v13 }
 0x2ff   :  { %v2301_v3 = vpop.eup %2300 }
 0x300   :  { %v1267_v14 = vmul.f32 %v2301_v3, %v2293_v0  ;;  %v1262_v15 = vpop.xlane.xlu1 %1261 }
 0x301   :  { %2306 = vrcp.f32 %v1262_v15 }
 0x302   :  { %1271 = vst.msk [vmem:[#allocation4] sm:$0xff] %vm918_vm2, %v1267_v14  ;;  %2176 = vmatmul.mubr.msk.f32.vlgmr.msra.gmra.mrb[16].mxu0 %vm918_vm2, %v1267_v14 }
 0x303   :  { %v2303_v16 = vpop.eup %2302  ;;  %2184 = vmatpush3.msra.mxu0 %v2647_v33  ;;  %2185 = vmatprep.mubr.msk.f32.mxu0 %vm2357_vm0, %v2358_v11 }
 0x304   :  { %v1268_v17 = vmul.f32 %v2303_v16, %v2295_v4  ;;  %2193 = vmatprep.subr.mxu0 %v2358_v11 }
 0x306   :  { %1272 = vst.msk [vmem:[#allocation4 + $0x8] sm:$0xff] %vm918_vm2, %v1268_v17  ;;  %2181 = vmatmul.mubr.msk.f32.vlgmr.msra.gmra.mrb[16].mxu1 %vm918_vm2, %v1268_v17 }
 0x307   :  { %v2305_v18 = vpop.eup %2304  ;;  %2189 = vmatpush3.msra.mxu1 %v2649_v34  ;;  %2190 = vmatprep.mubr.msk.f32.mxu1 %vm2357_vm0, %v2358_v11 }
 0x308   :  { %v1269_v19 = vmul.f32 %v2305_v18, %v2297_v6  ;;  %2198 = vmatprep.subr.mxu1 %v2358_v11 }
 0x30a   :  { %1273 = vst.msk [vmem:[#allocation4 + $0x10] sm:$0xff] %vm918_vm2, %v1269_v19  ;;  %2186 = vmatmul.mubr.msk.f32.vlgmr.msra.gmra.mrb[18].mxu0 %vm918_vm2, %v1269_v19 }
 0x30b   :  { %v2307_v20 = vpop.eup %2306  ;;  %2195 = vmatprep.mubr.msk.f32.mxu0 %vm2357_vm0, %v2358_v11  ;;  %2194 = vmatpush3.msra.mxu0 %v1567_v22 }
 0x30c   :  { %v1270_v21 = vmul.f32 %v2307_v20, %v2299_v8  ;;  %2203 = vmatprep.subr.mxu0 %v2358_v11 }
 0x30e   :  { %1274 = vst.msk [vmem:[#allocation4 + $0x18] sm:$0xff] %vm918_vm2, %v1270_v21  ;;  %2191 = vmatmul.mubr.msk.f32.vlgmr.msra.gmra.mrb[18].mxu1 %vm918_vm2, %v1270_v21 }
 0x30f   :  { %2200 = vmatprep.mubr.msk.f32.mxu1 %vm2357_vm0, %v2358_v11  ;;  %2199 = vmatpush3.msra.mxu1 %v1568_v23 }
 0x310   :  { %2208 = vmatprep.subr.mxu1 %v2358_v11 }
 0x3d5   :  { %v1344_v25 = vpop.f32.mrb[16].mxu0 }
 0x3d6   :  { %v2177_v26 = vpop.f32.mrb[17].mxu0  ;;  %2196 = vmatmul.mubr.msk.f32.vlgmr.msra.gmra.mrb[20].mxu0 %vm918_vm2, %v1344_v25 }
 0x3d7   :  { %2204 = vmatpush3.msra.mxu0 %v1569_v24  ;;  %2205 = vmatprep.mubr.msk.f32.mxu0 %vm2357_vm0, %v2358_v11 }
 0x3d9   :  { %v1417_v28 = vpop.f32.mrb[16].mxu1 }
 0x3da   :  { %v2182_v29 = vpop.f32.mrb[17].mxu1  ;;  %2201 = vmatmul.mubr.msk.f32.vlgmr.msra.gmra.mrb[20].mxu1 %vm918_vm2, %v1417_v28 }
 0x3db   :  { %2209 = vmatpush3.msra.mxu1 %v1570_v27  ;;  %2210 = vmatprep.mubr.msk.f32.mxu1 %vm2357_vm0, %v2358_v11 }
 0x3dd   :  { %v1490_v30 = vpop.f32.mrb[18].mxu0 }
 0x3de   :  { %v2187_v31 = vpop.f32.mrb[19].mxu0  ;;  %2206 = vmatmul.mubr.msk.f32.vlgmr.msra.gmra.mrb[22].mxu0 %vm918_vm2, %v1490_v30 }
 0x3e1   :  { %v1563_v32 = vpop.f32.mrb[18].mxu1 }
 0x3e2   :  { %v2192_v33 = vpop.f32.mrb[19].mxu1  ;;  %2211 = vmatmul.mubr.msk.f32.vlgmr.msra.gmra.mrb[22].mxu1 %vm918_vm2, %v1563_v32 }
 0x3e3   :  { %2319 = shalt.err (!%p2316_p4)
}
 0x3e4   :  { %s2320_s26 = scalar_lea.hbm %s2741_s5, 512 }
 0x3e5   :  { %p2321_p5 = scmp.ne.s32.totalorder %s2741_s5, %s2320_s26  ;;  %p2324_p6 = scmp.lt.u32.totalorder %s2320_s26, %s2741_s5 }
 0x3e7   :  { %p2326_p7 = pnand %p2324_p6, %p2321_p5 }
 0x3e9   :  { %2329 = shalt.err (!%p2326_p7)
}
 0x3ea   :  { %s2360_s6 = smov 128   ;;  %s2361_s7 = smov 8   ;;  %v1936_v36 = vld [vmem:[%s2739_s3] ss:$0 sm:$0xff] }
 0x3eb   :  { %1899 = dma.vmem_to_hbm [thread:$0]  %s1894_s23, 512, %s2741_s5, [#allocation5], %s2360_s6, %s2360_s6, %s2361_s7  }
 0x3ec   :  { %s2362_s12 = smov [#allocation2]  }
 0x3ed   :  { %s1881_s13 = sshll.u32 %s2362_s12, 4  ;;  %s1882_s13 = int_to_ptr.vmem [resolvable:$true] %s1881_s13 }
 0x3ee   :  { %s2330_s5 = scalar_lea.vmem %s1882_s13, 256  ;;  %p2335_p9 = scmp.lt.s32.totalorder %s1882_s13, %s1882_s13 }
 0x3ef   :  { %p2331_p8 = scmp.ne.s32.totalorder %s1882_s13, %s2330_s5  ;;  %p2336_p10 = scmp.lt.s32.totalorder %s2330_s5, %s2330_s5 }
 0x3f1   :  { %p2337_p11 = por %p2336_p10, %p2335_p9 }
 0x3f3   :  { %p2338_p12 = pnand %p2337_p11, %p2331_p8 }
 0x4a9   :  { %v1640_v11 = vpop.f32.mrb[20].mxu0 }
 0x4aa   :  { %v2197_v34 = vpop.f32.mrb[21].mxu0 }
 0x4ad   :  { %v1713_v35 = vpop.f32.mrb[20].mxu1 }
 0x4ae   :  { %v1863_v37 = vadd.f32 %v1713_v35, %v1640_v11  ;;  %v2202_v38 = vpop.f32.mrb[21].mxu1 }
 0x4b0   :  { %v1872_v39 = vadd.f32 %v1936_v36, %v1863_v37 }
 0x4b1   :  { %v1786_v40 = vpop.f32.mrb[22].mxu0 }
 0x4b2   :  { %1874 = vst.msk [vmem:[#allocation2] sm:$0xff] %vm71_vm1, %v1872_v39  ;;  %v2207_v41 = vpop.f32.mrb[23].mxu0 }
 0x4b5   :  { %v1859_v42 = vpop.f32.mrb[22].mxu1 }
 0x4b6   :  { %v1864_v43 = vadd.f32 %v1859_v42, %v1786_v40  ;;  %v2212_v44 = vpop.f32.mrb[23].mxu1 }
 0x4b8   :  { %v1873_v45 = vadd.f32 %v1936_v36, %v1864_v43 }
 0x4ba   :  { %1875 = vst.msk [vmem:[#allocation2 + $0x8] sm:$0xff] %vm71_vm1, %v1873_v45 }
 0x4bb   :  { %2341 = shalt.err (!%p2338_p12)
}
 0x4bc   :  { %s2342_s15 = scalar_lea.hbm %s2740_s4, 256 }
 0x4bd   :  { %p2343_p13 = scmp.ne.s32.totalorder %s2740_s4, %s2342_s15  ;;  %p2346_p0 = scmp.lt.u32.totalorder %s2342_s15, %s2740_s4 }
 0x4bf   :  { %p2348_p1 = pnand %p2346_p0, %p2343_p13 }
 0x4c1   :  { %2351 = shalt.err (!%p2348_p1)
}
 0x4c2   :  { %1887 = dma.vmem_to_hbm [thread:$0]  %s1882_s13, 256, %s2740_s4, [#allocation3], %s2360_s6, %s2360_s6, %s2361_s7  }
 0x4c3   :  { %2352 = dma.done.wait [#allocation3], 256  }
 0x4c4   :  { %2353 = vsyncadd [#allocation3], 4294967040 }
 0x4c5   :  { %2354 = dma.done.wait [#allocation5], 512  }
 0x4c6   :  { %2355 = vsyncadd [#allocation5], 4294966784 }
 0x4c7   :  { %1906 = vsyncpa [#allocation3], 1 }
 0x4c8   :  { %1907 = vsyncpa [#allocation5], 1 }

</bundles_post_ra>
